<compile_context>
chip_gen: v7x
topology: tpu7x:2x2x1
jax: 0.10.0
libtpu: 0.0.40
codegen_flags: <defaults>
</compile_context>

<pallas_src>
import functools

import jax
import jax.numpy as jnp
from jax.experimental import pallas as pl
from jax.experimental.pallas import tpu as pltpu

FOLD = 2  # batch rows folded into the lane dim (best when FOLD*input_dim is a multiple of 128)


def _round_up(n: int, m: int) -> int:
    return ((n + m - 1) // m) * m


def _round_down(n: int, m: int) -> int:
    return (n // m) * m


def autoencoder_kernel(x_ref, w1_ref, b1_ref, w2_ref, b2_ref, enc_ref, dec_ref):
    # Encoder: Linear(input_dim -> hidden_dim) + ReLU, on the FOLD-folded layout.
    x = x_ref[...]
    h = jnp.dot(x, w1_ref[...], preferred_element_type=jnp.float32) + b1_ref[...]
    enc = jnp.maximum(h, 0.0)
    enc_ref[...] = enc.astype(enc_ref.dtype)

    # Decoder: Linear(hidden_dim -> input_dim) + Sigmoid.
    d = (jnp.dot(enc.astype(w2_ref.dtype), w2_ref[...], preferred_element_type=jnp.float32)
         + b2_ref[...])
    # Exact sigmoid via a single EUP transcendental: sigmoid(d) = 0.5 * tanh(d / 2) + 0.5.
    dec = 0.5 * jnp.tanh(0.5 * d) + 0.5
    dec_ref[...] = dec.astype(dec_ref.dtype)


def fold_params(w1_t, b1, w2_t, b2, *, fold: int = FOLD):
    """Build block-diagonal folded parameters ONCE per model (static w.r.t. the forward).

    w1_t: (D, H) encoder weight pre-transposed; b1: (H,)/(1,H); w2_t: (H, D); b2: (D,)/(1,D).
    """
    w1f = jnp.kron(jnp.eye(fold, dtype=w1_t.dtype), w1_t)   # (fold*D, fold*H), block-diag
    w2f = jnp.kron(jnp.eye(fold, dtype=w2_t.dtype), w2_t)   # (fold*H, fold*D), block-diag
    b1f = jnp.tile(jnp.reshape(b1, (1, -1)), (1, fold))     # (1, fold*H)
    b2f = jnp.tile(jnp.reshape(b2, (1, -1)), (1, fold))     # (1, fold*D)
    return w1f, b1f, w2f, b2f


@functools.partial(jax.jit, static_argnames=("fold", "tile_rows"))
def autoencoder_forward(x, w1f, b1f, w2f, b2f, *, fold: int = FOLD, tile_rows: int = 8192):
    """x: (B, D); folded params from fold_params(). Returns (encoded (B, H), decoded (B, D))."""
    B, D = x.shape
    FD, FH = w1f.shape
    if FD != fold * D:
        raise ValueError("folded weights do not match x's feature dim / fold")
    H = FH // fold

    itemsize = jnp.dtype(x.dtype).itemsize
    q = {4: 8, 2: 16, 1: 32}.get(itemsize, 8)   # sublane quantum of the folded row axis

    # Pad the batch only to a multiple of `fold` (needed for the row-major fold reshape);
    # everything beyond that is handled by the ragged last grid tile (rows are independent:
    # out-of-bounds reads are harmless garbage, out-of-bounds writes are masked by the DMA).
    padded_B = _round_up(B, fold)
    if padded_B != B:
        x = jnp.pad(x, ((0, padded_B - B), (0, 0)))
    Bf = padded_B // fold
    xf = x.reshape(Bf, FD)   # free row-major reshape: fold `fold` rows into the lane dim

    # Folded-row tile size.
    if Bf <= q:
        tbf = Bf   # block == full array dim (legal even when not a multiple of the quantum)
    else:
        tbf = min(_round_up(max(1, tile_rows // fold), q), _round_down(Bf, q))
        # VMEM clamp: keep double-buffered x/enc/dec tiles under ~12 MiB (v5e's default
        # scoped-VMEM limit is 16 MiB; v6e/v7x default to 32 MiB).
        bytes_per_frow = (2 * FD + FH) * itemsize
        tbf = min(tbf, max(q, _round_down((12 << 20) // (2 * bytes_per_frow), q)))
        # Keep >= 2 grid steps when there is enough work so the "parallel" batch axis can
        # feed both TensorCores on v7x.
        if pl.cdiv(Bf, tbf) < 2 and Bf >= 2 * q:
            tbf = min(tbf, _round_up(pl.cdiv(Bf, 2), q))

    grid = (pl.cdiv(Bf, tbf),)

    cost = pl.CostEstimate(
        flops=4 * padded_B * fold * D * H,            # two folded MXU matmuls
        transcendentals=padded_B * D,                 # one tanh per decoded element
        bytes_accessed=(xf.size + w1f.size + b1f.size + w2f.size + b2f.size
                        + Bf * (FH + FD)) * itemsize,
    )

    encf, decf = pl.pallas_call(
        autoencoder_kernel,
        grid=grid,
        in_specs=[
            pl.BlockSpec((tbf, FD), lambda i: (i, 0)),   # x tile (lane-dense, 128 lanes)
            pl.BlockSpec((FD, FH), lambda i: (0, 0)),    # w1 (resident across tiles)
            pl.BlockSpec((1, FH), lambda i: (0, 0)),     # b1 (resident)
            pl.BlockSpec((FH, FD), lambda i: (0, 0)),    # w2 (resident)
            pl.BlockSpec((1, FD), lambda i: (0, 0)),     # b2 (resident)
        ],
        out_specs=(
            pl.BlockSpec((tbf, FH), lambda i: (i, 0)),   # encoded tile
            pl.BlockSpec((tbf, FD), lambda i: (i, 0)),   # decoded tile (lane-dense, 128 lanes)
        ),
        out_shape=(
            jax.ShapeDtypeStruct((Bf, FH), x.dtype),
            jax.ShapeDtypeStruct((Bf, FD), x.dtype),
        ),
        compiler_params=pltpu.CompilerParams(dimension_semantics=("parallel",)),
        cost_estimate=cost,
    )(xf, w1f, b1f, w2f, b2f)

    # Undo the fold (free row-major reshape); drop the (at most fold-1) pad rows.
    encoded = encf.reshape(padded_B, H)
    decoded = decf.reshape(padded_B, D)
    if padded_B != B:
        encoded = encoded[:B]
        decoded = decoded[:B]
    return encoded, decoded


def _reference(x, w1_t, b1, w2_t, b2):
    enc = jnp.maximum(
        jnp.dot(x, w1_t, precision=jax.lax.Precision.HIGHEST) + b1.reshape(1, -1), 0.0)
    dec = jax.nn.sigmoid(
        jnp.dot(enc, w2_t, precision=jax.lax.Precision.HIGHEST) + b2.reshape(1, -1))
    return enc, dec


if __name__ == "__main__":
    input_dim, hidden_dim = 64, 32
    key = jax.random.PRNGKey(0)
    k_x, k_w1, k_b1, k_w2, k_b2, k_x2 = jax.random.split(key, 6)

    # Inputs/params are random multiples of powers of two, so both matmuls are exact in the
    # f32 accumulator for kernel and reference alike (and exactly representable in bf16):
    # the checks are insensitive to MXU precision/pass-decomposition differences, and the
    # only residual difference in `decoded` is the transcendental implementation.
    def _quantized(k, shape, scale, levels):
        return scale * jax.random.randint(k, shape, -levels, levels + 1).astype(jnp.float32)

    w1_t = _quantized(k_w1, (input_dim, hidden_dim), 0.125, 2)   # (D, H) = W1^T
    b1 = _quantized(k_b1, (1, hidden_dim), 0.25, 2)
    w2_t = _quantized(k_w2, (hidden_dim, input_dim), 0.125, 2)   # (H, D) = W2^T
    b2 = _quantized(k_b2, (1, input_dim), 0.25, 2)
    w1f, b1f, w2f, b2f = fold_params(w1_t, b1, w2_t, b2)         # folded once, reused per call

    # Case 1: small batch, f32 (batch=8, input_dim=64, hidden_dim=32).
    B = 8
    x = _quantized(k_x, (B, input_dim), 0.25, 4)
    encoded, decoded = autoencoder_forward(x, w1f, b1f, w2f, b2f)
    jax.block_until_ready((encoded, decoded))
    assert encoded.shape == (B, hidden_dim) and decoded.shape == (B, input_dim)
    enc_ref, dec_ref = _reference(x, w1_t, b1, w2_t, b2)
    assert jnp.allclose(encoded, enc_ref, atol=1e-5), "encoded mismatch (f32)"
    assert jnp.allclose(decoded, dec_ref, atol=1e-4), "decoded mismatch (f32)"

    # Case 2: batch not a multiple of fold/tile (exercises fold pad + ragged last tile).
    B2 = 37
    x2 = _quantized(k_x2, (B2, input_dim), 0.25, 4)
    encoded2, decoded2 = autoencoder_forward(x2, w1f, b1f, w2f, b2f, tile_rows=32)
    jax.block_until_ready((encoded2, decoded2))
    assert encoded2.shape == (B2, hidden_dim) and decoded2.shape == (B2, input_dim)
    enc_ref2, dec_ref2 = _reference(x2, w1_t, b1, w2_t, b2)
    assert jnp.allclose(encoded2, enc_ref2, atol=1e-5), "encoded mismatch (ragged)"
    assert jnp.allclose(decoded2, dec_ref2, atol=1e-4), "decoded mismatch (ragged)"

    # Case 3: bf16 I/O (halves HBM traffic; recommended on v6e/v7x), f32 accumulate/epilogue.
    xb = x.astype(jnp.bfloat16)
    w1fb, b1fb, w2fb, b2fb = fold_params(
        w1_t.astype(jnp.bfloat16), b1.astype(jnp.bfloat16),
        w2_t.astype(jnp.bfloat16), b2.astype(jnp.bfloat16))
    encoded_b, decoded_b = autoencoder_forward(xb, w1fb, b1fb, w2fb, b2fb)
    jax.block_until_ready((encoded_b, decoded_b))
    assert jnp.allclose(encoded_b.astype(jnp.float32), enc_ref, atol=1e-2), "encoded mismatch (bf16)"
    assert jnp.allclose(decoded_b.astype(jnp.float32), dec_ref, atol=1e-2), "decoded mismatch (bf16)"

    print("KERNEL_OK")
</pallas_src>

<mosaic_0001>
module attributes {stable_mosaic.version = 11 : i64} {
  func.func @autoencoder_kernel(%arg0: i32, %arg1: memref<4x128xf32, #tpu.memory_space<vmem>>, %arg2: memref<128x64xf32, #tpu.memory_space<vmem>>, %arg3: memref<1x64xf32, #tpu.memory_space<vmem>>, %arg4: memref<64x128xf32, #tpu.memory_space<vmem>>, %arg5: memref<1x128xf32, #tpu.memory_space<vmem>>, %arg6: memref<4x64xf32, #tpu.memory_space<vmem>>, %arg7: memref<4x128xf32, #tpu.memory_space<vmem>>) attributes {dimension_semantics = [#tpu.dimension_semantics<parallel>], iteration_bounds = array<i64: 1>, scalar_prefetch = 0 : i64, scratch_operands = 0 : i64, tpu.core_type = #tpu.core_type<tc>, window_params = [{transform_indices = @transform_0, window_bounds = array<i64: 4, 128>}, {pipeline_mode = #tpu.pipeline_mode<synchronous>, transform_indices = @transform_1, window_bounds = array<i64: 128, 64>}, {pipeline_mode = #tpu.pipeline_mode<synchronous>, transform_indices = @transform_2, window_bounds = array<i64: 1, 64>}, {pipeline_mode = #tpu.pipeline_mode<synchronous>, transform_indices = @transform_3, window_bounds = array<i64: 64, 128>}, {pipeline_mode = #tpu.pipeline_mode<synchronous>, transform_indices = @transform_4, window_bounds = array<i64: 1, 128>}, {transform_indices = @transform_5, window_bounds = array<i64: 4, 64>}, {transform_indices = @transform_6, window_bounds = array<i64: 4, 128>}]} {
    %c0 = arith.constant 0 : index
    %c0_0 = arith.constant 0 : index
    %0 = vector.load %arg1[%c0, %c0_0] : memref<4x128xf32, #tpu.memory_space<vmem>>, vector<4x128xf32>
    %c0_1 = arith.constant 0 : index
    %c0_2 = arith.constant 0 : index
    %1 = vector.load %arg2[%c0_1, %c0_2] : memref<128x64xf32, #tpu.memory_space<vmem>>, vector<128x64xf32>
    %cst = arith.constant dense<0.000000e+00> : vector<4x64xf32>
    %2 = tpu.matmul %0, %1, %cst {dimension_numbers = #tpu.dot_dimension_numbers<[1], [0], [0], [1], [0, 0, 1, 1], [], []>} : vector<4x128xf32>, vector<128x64xf32>, vector<4x64xf32> -> vector<4x64xf32>
    %c0_3 = arith.constant 0 : index
    %c0_4 = arith.constant 0 : index
    %3 = vector.load %arg3[%c0_3, %c0_4] : memref<1x64xf32, #tpu.memory_space<vmem>>, vector<1x64xf32>
    %4 = vector.broadcast %3 : vector<1x64xf32> to vector<4x64xf32>
    %5 = arith.addf %2, %4 : vector<4x64xf32>
    %cst_5 = arith.constant 0.000000e+00 : f32
    %6 = vector.broadcast %cst_5 : f32 to vector<4x64xf32>
    %7 = arith.maximumf %5, %6 : vector<4x64xf32>
    %c0_6 = arith.constant 0 : index
    %c0_7 = arith.constant 0 : index
    %8 = vector.load %arg6[%c0_6, %c0_7] : memref<4x64xf32, #tpu.memory_space<vmem>>, vector<4x64xf32>
    tpu.vector_store %arg6[%c0_6, %c0_7], %7 {strides = array<i32>} : memref<4x64xf32, #tpu.memory_space<vmem>>, vector<4x64xf32>,
    %c0_8 = arith.constant 0 : index
    %c0_9 = arith.constant 0 : index
    %9 = vector.load %arg4[%c0_8, %c0_9] : memref<64x128xf32, #tpu.memory_space<vmem>>, vector<64x128xf32>
    %cst_10 = arith.constant dense<0.000000e+00> : vector<4x128xf32>
    %10 = tpu.matmul %7, %9, %cst_10 {dimension_numbers = #tpu.dot_dimension_numbers<[1], [0], [0], [1], [0, 0, 1, 1], [], []>} : vector<4x64xf32>, vector<64x128xf32>, vector<4x128xf32> -> vector<4x128xf32>
    %c0_11 = arith.constant 0 : index
    %c0_12 = arith.constant 0 : index
    %11 = vector.load %arg5[%c0_11, %c0_12] : memref<1x128xf32, #tpu.memory_space<vmem>>, vector<1x128xf32>
    %12 = vector.broadcast %11 : vector<1x128xf32> to vector<4x128xf32>
    %13 = arith.addf %10, %12 : vector<4x128xf32>
    %cst_13 = arith.constant 5.000000e-01 : f32
    %14 = vector.broadcast %cst_13 : f32 to vector<4x128xf32>
    %15 = arith.mulf %14, %13 : vector<4x128xf32>
    %16 = math.tanh %15 : vector<4x128xf32>
    %cst_14 = arith.constant 5.000000e-01 : f32
    %17 = vector.broadcast %cst_14 : f32 to vector<4x128xf32>
    %18 = arith.mulf %17, %16 : vector<4x128xf32>
    %cst_15 = arith.constant 5.000000e-01 : f32
    %19 = vector.broadcast %cst_15 : f32 to vector<4x128xf32>
    %20 = arith.addf %18, %19 : vector<4x128xf32>
    %c0_16 = arith.constant 0 : index
    %c0_17 = arith.constant 0 : index
    %21 = vector.load %arg7[%c0_16, %c0_17] : memref<4x128xf32, #tpu.memory_space<vmem>>, vector<4x128xf32>
    tpu.vector_store %arg7[%c0_16, %c0_17], %20 {strides = array<i32>} : memref<4x128xf32, #tpu.memory_space<vmem>>, vector<4x128xf32>,
    return
  }
  func.func @transform_0(%arg0: i32) -> (i32, i32) {
    %c0_i32 = arith.constant 0 : i32
    %c0_i32_0 = arith.constant 0 : i32
    return %arg0, %c0_i32 : i32, i32
  }
  func.func @transform_1(%arg0: i32) -> (i32, i32) {
    %c0_i32 = arith.constant 0 : i32
    %c0_i32_0 = arith.constant 0 : i32
    %c0_i32_1 = arith.constant 0 : i32
    return %c0_i32, %c0_i32_0 : i32, i32
  }
  func.func @transform_2(%arg0: i32) -> (i32, i32) {
    %c0_i32 = arith.constant 0 : i32
    %c0_i32_0 = arith.constant 0 : i32
    %c0_i32_1 = arith.constant 0 : i32
    return %c0_i32, %c0_i32_0 : i32, i32
  }
  func.func @transform_3(%arg0: i32) -> (i32, i32) {
    %c0_i32 = arith.constant 0 : i32
    %c0_i32_0 = arith.constant 0 : i32
    %c0_i32_1 = arith.constant 0 : i32
    return %c0_i32, %c0_i32_0 : i32, i32
  }
  func.func @transform_4(%arg0: i32) -> (i32, i32) {
    %c0_i32 = arith.constant 0 : i32
    %c0_i32_0 = arith.constant 0 : i32
    %c0_i32_1 = arith.constant 0 : i32
    return %c0_i32, %c0_i32_0 : i32, i32
  }
  func.func @transform_5(%arg0: i32) -> (i32, i32) {
    %c0_i32 = arith.constant 0 : i32
    %c0_i32_0 = arith.constant 0 : i32
    return %arg0, %c0_i32 : i32, i32
  }
  func.func @transform_6(%arg0: i32) -> (i32, i32) {
    %c0_i32 = arith.constant 0 : i32
    %c0_i32_0 = arith.constant 0 : i32
    return %arg0, %c0_i32 : i32, i32
  }
}

</mosaic_0001>

<bundles_post_ra>
// kernel: autoencoder_forward.1
= control target key start
LH: loop header
LB: loop body
LE: loop exit
PB: predicated region body
PF: predicated region fallthrough
CT: control target
= control target key end

     0   :  { %v345_v0 = vmov 0.0|0.0   ;;  %vm346_vm0 = vmmov 0   ;;  %v347_v4 = vmov 0.0   ;;  %vm117_vm1 = vcmask 519168   ;;  %s470_s1 = inlined_call_operand.vmem [shape: f32[128,64], index: 1, kind: input, shape index: {}]   ;;  %s471_s3 = inlined_call_operand.vmem [shape: f32[64,128], index: 3, kind: input, shape index: {}]   ;;  %s472_s0 = inlined_call_operand.vmem [shape: f32[4,128], index: 0, kind: input, shape index: {}]   ;;  %s473_s2 = inlined_call_operand.vmem [shape: f32[1,64], index: 2, kind: input, shape index: {}]   ;;  %s474_s5 = inlined_call_operand.vmem [shape: f32[4,64], index: 5, kind: output, shape index: {0}]   ;;  %s475_s4 = inlined_call_operand.vmem [shape: f32[1,128], index: 4, kind: input, shape index: {}]   ;;  %s476_s6 = inlined_call_operand.vmem [shape: f32[4,128], index: 6, kind: output, shape index: {1}]  }
   0x1   :  { %304 = vmatprep.subr.bf16.mxu0 %v345_v0  ;;  %v23_v1 = vld [vmem:[%s470_s1] sm:$0xff]  ;;  %v24_v2 = vld [vmem:[%s470_s1 + $0x8] sm:$0xff]  ;;  %v25_v3 = vld [vmem:[%s470_s1 + $0x10] sm:$0xff]  ;;  %282 = vmatprep.mubr.msk.f32.mxu0 %vm346_vm0, %v347_v4  ;;  %vm134_vm2 = vcmask 523264  }
   0x2   :  { %v305_v5 = vpack.c.bf16 %v24_v2, %v23_v1  ;;  %v26_v6 = vld [vmem:[%s470_s1 + $0x18] sm:$0xff]  ;;  %328 = vmatprep.subr.bf16.mxu1 %v345_v0  ;;  %301 = vmatprep.mubr.msk.f32.mxu1 %vm346_vm0, %v347_v4  ;;  %v27_v8 = vld [vmem:[%s470_s1 + $0x20] sm:$0xff]  ;;  %v28_v9 = vld [vmem:[%s470_s1 + $0x28] sm:$0xff] }
   0x3   :  { %v308_v7 = vpack.c.bf16 %v26_v6, %v25_v3  ;;  %v119_v10 = vld [vmem:[%s471_s3] sm:$0xff]  ;;  %v120_v11 = vld [vmem:[%s471_s3 + $0x8] sm:$0xff]  ;;  %v121_v12 = vld [vmem:[%s471_s3 + $0x10] sm:$0xff]  ;;  %v311_v14 = vpack.c.bf16 %v28_v9, %v27_v8 }
   0x4   :  { %306 = vmatpush3.bf16.msra.mxu0 %v305_v5  ;;  %v122_v13 = vld [vmem:[%s471_s3 + $0x18] sm:$0xff]  ;;  %v329_v15 = vpack.c.bf16 %v120_v11, %v119_v10  ;;  %v29_v16 = vld [vmem:[%s470_s1 + $0x30] sm:$0xff]  ;;  %v123_v19 = vld [vmem:[%s471_s3 + $0x20] sm:$0xff] }
   0x5   :  { %307 = vmatprep.subr.bf16.mxu0 %v345_v0  ;;  %v30_v17 = vld [vmem:[%s470_s1 + $0x38] sm:$0xff]  ;;  %v332_v18 = vpack.c.bf16 %v122_v13, %v121_v12  ;;  %v124_v20 = vld [vmem:[%s471_s3 + $0x28] sm:$0xff]  ;;  %v31_v22 = vld [vmem:[%s470_s1 + $0x40] sm:$0xff] }
   0x6   :  { %330 = vmatpush3.bf16.msra.mxu1 %v329_v15  ;;  %v314_v21 = vpack.c.bf16 %v30_v17, %v29_v16  ;;  %v32_v23 = vld [vmem:[%s470_s1 + $0x48] sm:$0xff]  ;;  %v335_v24 = vpack.c.bf16 %v124_v20, %v123_v19  ;;  %v33_v26 = vld [vmem:[%s470_s1 + $0x50] sm:$0xff]  ;;  %v34_v27 = vld [vmem:[%s470_s1 + $0x58] sm:$0xff] }
   0x7   :  { %331 = vmatprep.subr.bf16.mxu1 %v345_v0  ;;  %v317_v25 = vpack.c.bf16 %v32_v23, %v31_v22  ;;  %v320_v28 = vpack.c.bf16 %v34_v27, %v33_v26  ;;  %v35_v29 = vld [vmem:[%s470_s1 + $0x60] sm:$0xff]  ;;  %v36_v30 = vld [vmem:[%s470_s1 + $0x68] sm:$0xff]  ;;  %v37_v32 = vld [vmem:[%s470_s1 + $0x70] sm:$0xff] }
   0x8   :  { %309 = vmatpush3.bf16.msra.mxu0 %v308_v7  ;;  %v323_v31 = vpack.c.bf16 %v36_v30, %v35_v29  ;;  %v38_v33 = vld [vmem:[%s470_s1 + $0x78] sm:$0xff]  ;;  %v22_v35 = vld [vmem:[%s472_s0] sm:$0xf]  ;;  %v125_v36 = vld [vmem:[%s471_s3 + $0x30] sm:$0xff] }
   0x9   :  { %310 = vmatprep.subr.bf16.mxu0 %v345_v0  ;;  %v326_v34 = vpack.c.bf16 %v38_v33, %v37_v32  ;;  %v126_v37 = vld [vmem:[%s471_s3 + $0x38] sm:$0xff]  ;;  %v221_v39 = vld [vmem:[%s473_s2] ss:$0 sm:$0xff] }
   0xa   :  { %333 = vmatpush3.bf16.msra.mxu1 %v332_v18  ;;  %v338_v38 = vpack.c.bf16 %v126_v37, %v125_v36  ;;  %v222_v44 = vld [vmem:[%s475_s4] ss:$0 sm:$0xff] }
   0xb   :  { %334 = vmatprep.subr.bf16.mxu1 %v345_v0 }
   0xc   :  { %312 = vmatpush3.bf16.msra.mxu0 %v311_v14 }
   0xd   :  { %313 = vmatprep.subr.bf16.mxu0 %v345_v0 }
   0xe   :  { %336 = vmatpush3.bf16.msra.mxu1 %v335_v24 }
   0xf   :  { %337 = vmatprep.subr.bf16.mxu1 %v345_v0 }
  0x10   :  { %315 = vmatpush3.bf16.msra.mxu0 %v314_v21 }
  0x11   :  { %316 = vmatprep.subr.bf16.mxu0 %v345_v0 }
  0x12   :  { %339 = vmatpush3.bf16.msra.mxu1 %v338_v38 }
  0x14   :  { %318 = vmatpush3.bf16.msra.mxu0 %v317_v25 }
  0x15   :  { %319 = vmatprep.subr.bf16.mxu0 %v345_v0 }
  0x18   :  { %321 = vmatpush3.bf16.msra.mxu0 %v320_v28 }
  0x19   :  { %322 = vmatprep.subr.bf16.mxu0 %v345_v0 }
  0x1c   :  { %324 = vmatpush3.bf16.msra.mxu0 %v323_v31 }
  0x1d   :  { %325 = vmatprep.subr.bf16.mxu0 %v345_v0 }
  0x20   :  { %327 = vmatpush3.bf16.msra.mxu0 %v326_v34 }
  0x23   :  { %283 = vmatmul.mubr.f32.vlgmr.msra.gmra.mrb[0].mxu0 %v22_v35 }
  0xf6   :  { %v112_v40 = vpop.f32.mrb[0].mxu0 }
  0xf7   :  { %v113_v41 = vadd.f32 %v221_v39, %v112_v40  ;;  %v284_v42 = vpop.f32.mrb[1].mxu0 }
  0xf9   :  { %v116_v43 = vmax.f32 %v113_v41, 0.0 }
  0xfb   :  { %118 = vst.msk [vmem:[%s474_s5] sm:$0xf] %vm117_vm1, %v116_v43  ;;  %302 = vmatmul.mubr.msk.f32.vlgmr.msra.gmra.mrb[0].mxu1 %vm134_vm2, %v116_v43 }
 0x1ce   :  { %v204_v45 = vpop.f32.mrb[0].mxu1 }
 0x1cf   :  { %v205_v46 = vadd.f32 %v222_v44, %v204_v45  ;;  %v303_v47 = vpop.f32.mrb[1].mxu1 }
 0x1d1   :  { %v208_v48 = vmul.f32 0.5, %v205_v46 }
 0x1d3   :  { %343 = vtanh.f32 %v208_v48 }
 0x1dd   :  { %v344_v49 = vpop.eup %343 }
 0x1de   :  { %v210_v50 = vmul.f32 0.5, %v344_v49 }
 0x1e0   :  { %v211_v51 = vadd.f32 0.5, %v210_v50 }
 0x1e2   :  { %212 = vst [vmem:[%s476_s6] sm:$0xf] %v211_v51 }

</bundles_post_ra>
